<compile_context>
chip_gen: v7x
topology: tpu7x:2x2x1
jax: 0.10.0
libtpu: 0.0.40
codegen_flags: <defaults>
</compile_context>

<pallas_src>
import jax
import jax.numpy as jnp
import numpy as np
from jax.experimental import pallas as pl
from jax.experimental.pallas import tpu as pltpu


def noise_apply_kernel(x_ref, noise_ref, w_ref, o_ref):
    # x: (TM, TK), noise: (1, TK), w: (TM, 1)  ->  o: (TM, TK)
    # Single fused broadcast-mul + add on the VPU (mem-bound elementwise op).
    o_ref[...] = x_ref[...] + noise_ref[...] * w_ref[...]


def _choose_tiles(nc, hw, dtype_bytes, max_cols=2048, target_tile_bytes=2 << 20):
    """Pick (row tile, col tile) for the flattened (N*C, H*W) view."""
    # Lane tile: keep a multiple of 128 when possible (lane-dense stores);
    # otherwise take the full spatial extent (block == full array dim is legal).
    if hw % 128 == 0:
        tk = min(hw, max_cols)
    else:
        tk = hw
    # Row tile: multiple of 8 sublanes, sized so the per-tile footprint stays a
    # few MiB (double-buffered x-in + out << 32 MiB scoped default, v7x-safe).
    tm = max(1, target_tile_bytes // (tk * dtype_bytes))
    if nc < 8:
        tm = nc                              # block dim == full array dim
    else:
        tm = min((tm // 8) * 8, (nc // 8) * 8)
        tm = max(8, tm)
    return tm, tk


def noise_apply_forward(x, noise, weight):
    """x: (N, C, H, W); noise: (1, 1, H, W); weight: (C,)."""
    N, C, H, W = x.shape
    assert noise.shape == (1, 1, H, W)
    assert weight.shape == (C,)
    NC, HW = N * C, H * W

    # Lane-dense 2-D views.
    x2 = x.reshape(NC, HW)
    noise2 = noise.reshape(1, HW)
    # Per-row (i.e. per (n, c)) noise strength; tiny (N*C floats), built once in
    # the wrapper so the kernel body is a single mul + add on resident operands.
    w_rows = jnp.broadcast_to(weight[None, :], (N, C)).reshape(NC, 1)

    tm, tk = _choose_tiles(NC, HW, x.dtype.itemsize)
    grid = (pl.cdiv(NC, tm), pl.cdiv(HW, tk))

    y2 = pl.pallas_call(
        noise_apply_kernel,
        out_shape=jax.ShapeDtypeStruct((NC, HW), x.dtype),
        grid=grid,
        in_specs=[
            pl.BlockSpec((tm, tk), lambda i, j: (i, j)),   # x tile
            pl.BlockSpec((1, tk), lambda i, j: (0, j)),    # noise row (shared)
            pl.BlockSpec((tm, 1), lambda i, j: (i, 0)),    # per-row weight col
        ],
        out_specs=pl.BlockSpec((tm, tk), lambda i, j: (i, j)),
        compiler_params=pltpu.CompilerParams(
            dimension_semantics=("parallel", "parallel"),
        ),
    )(x2, noise2, w_rows)

    return y2.reshape(N, C, H, W)


if __name__ == "__main__":
    # Small shapes consistent with the module: batch=2, channels=4, res=16.
    resolution = 16
    channels = 4
    batch = 2

    key = jax.random.PRNGKey(0)
    kx, kn, kw = jax.random.split(key, 3)
    x = jax.random.normal(
        kx, (batch, channels, resolution, resolution), dtype=jnp.float32
    )
    noise = jax.random.normal(
        kn, (1, 1, resolution, resolution), dtype=jnp.float32
    )
    # nn.Parameter(torch.zeros(channels)) is zero-initialized in the module;
    # use deterministic non-zero values so the noise path is actually exercised.
    weight = jax.random.normal(kw, (channels,), dtype=jnp.float32) * 0.1

    y = noise_apply_forward(x, noise, weight)
    y = jax.block_until_ready(y)

    # Pure-JAX reference check (matches the PyTorch forward exactly).
    y_ref = x + noise * weight.reshape(1, -1, 1, 1)
    np.testing.assert_allclose(np.asarray(y), np.asarray(y_ref), rtol=1e-6, atol=1e-6)

    print("KERNEL_OK")
</pallas_src>

<mosaic_0001>
module attributes {stable_mosaic.version = 11 : i64} {
  func.func @noise_apply_kernel(%arg0: i32, %arg1: i32, %arg2: memref<8x256xf32, #tpu.memory_space<vmem>>, %arg3: memref<1x256xf32, #tpu.memory_space<vmem>>, %arg4: memref<8x1xf32, #tpu.memory_space<vmem>>, %arg5: memref<8x256xf32, #tpu.memory_space<vmem>>) attributes {dimension_semantics = [#tpu.dimension_semantics<parallel>, #tpu.dimension_semantics<parallel>], iteration_bounds = array<i64: 1, 1>, scalar_prefetch = 0 : i64, scratch_operands = 0 : i64, tpu.core_type = #tpu.core_type<tc>, window_params = [{transform_indices = @transform_0, window_bounds = array<i64: 8, 256>}, {transform_indices = @transform_1, window_bounds = array<i64: 1, 256>}, {transform_indices = @transform_2, window_bounds = array<i64: 8, 1>}, {transform_indices = @transform_3, window_bounds = array<i64: 8, 256>}]} {
    %c0 = arith.constant 0 : index
    %c0_0 = arith.constant 0 : index
    %0 = vector.load %arg2[%c0, %c0_0] : memref<8x256xf32, #tpu.memory_space<vmem>>, vector<8x256xf32>
    %c0_1 = arith.constant 0 : index
    %c0_2 = arith.constant 0 : index
    %1 = vector.load %arg3[%c0_1, %c0_2] : memref<1x256xf32, #tpu.memory_space<vmem>>, vector<1x256xf32>
    %c0_3 = arith.constant 0 : index
    %c0_4 = arith.constant 0 : index
    %2 = vector.load %arg4[%c0_3, %c0_4] : memref<8x1xf32, #tpu.memory_space<vmem>>, vector<8x1xf32>
    %3 = vector.broadcast %1 : vector<1x256xf32> to vector<8x256xf32>
    %4 = vector.broadcast %2 : vector<8x1xf32> to vector<8x256xf32>
    %5 = arith.mulf %3, %4 : vector<8x256xf32>
    %6 = arith.addf %0, %5 : vector<8x256xf32>
    %c0_5 = arith.constant 0 : index
    %c0_6 = arith.constant 0 : index
    %7 = vector.load %arg5[%c0_5, %c0_6] : memref<8x256xf32, #tpu.memory_space<vmem>>, vector<8x256xf32>
    tpu.vector_store %arg5[%c0_5, %c0_6], %6 {strides = array<i32>} : memref<8x256xf32, #tpu.memory_space<vmem>>, vector<8x256xf32>,
    return
  }
  func.func @transform_0(%arg0: i32, %arg1: i32) -> (i32, i32) {
    %c0_i32 = arith.constant 0 : i32
    return %arg0, %arg1 : i32, i32
  }
  func.func @transform_1(%arg0: i32, %arg1: i32) -> (i32, i32) {
    %c0_i32 = arith.constant 0 : i32
    %c0_i32_0 = arith.constant 0 : i32
    return %c0_i32, %arg1 : i32, i32
  }
  func.func @transform_2(%arg0: i32, %arg1: i32) -> (i32, i32) {
    %c0_i32 = arith.constant 0 : i32
    %c0_i32_0 = arith.constant 0 : i32
    return %arg0, %c0_i32 : i32, i32
  }
  func.func @transform_3(%arg0: i32, %arg1: i32) -> (i32, i32) {
    %c0_i32 = arith.constant 0 : i32
    return %arg0, %arg1 : i32, i32
  }
}

</mosaic_0001>

<bundles_post_ra>
// kernel: tpu_custom_call.1
= control target key start
LH: loop header
LB: loop body
LE: loop exit
PB: predicated region body
PF: predicated region fallthrough
CT: control target
= control target key end

     0   :  { %8 = vsyncpa [#allocation3], 0  ;;  %s173_s0 = inlined_call_operand.hbm [shape: f32[8,256], index: 0, kind: input, shape index: {}]   ;;  %s174_s1 = inlined_call_operand.vmem [shape: f32[1,256], index: 1, kind: input, shape index: {}]   ;;  %s175_s2 = inlined_call_operand.vmem [shape: f32[8,1], index: 2, kind: input, shape index: {}]   ;;  %s176_s3 = inlined_call_operand.hbm [shape: f32[8,256], index: 3, kind: output, shape index: {}]  }
   0x1   :  { %9 = vsyncpa [#allocation4], 0  ;;  %s120_s12 = smov [#allocation2]   ;;  %s72_s16 = scalar_lea.hbm %s173_s0, 256 }
   0x2   :  { %s16_s13 = sshll.u32 %s120_s12, 4  ;;  %p73_p0 = scmp.ne.s32.totalorder %s173_s0, %s72_s16  ;;  %s17_s13 = int_to_ptr.vmem [resolvable:$true] %s16_s13 }
   0x3   :  { %p76_p1 = scmp.lt.u32.totalorder %s72_s16, %s173_s0 }
   0x5   :  { %p78_p2 = pnand %p76_p1, %p73_p0 }
   0x7   :  { %81 = shalt.err (!%p78_p2)
}
   0x8   :  { %s82_s21 = scalar_lea.vmem %s17_s13, 256  ;;  %p87_p4 = scmp.lt.s32.totalorder %s17_s13, %s17_s13 }
   0x9   :  { %p83_p3 = scmp.ne.s32.totalorder %s17_s13, %s82_s21  ;;  %p88_p5 = scmp.lt.s32.totalorder %s82_s21, %s82_s21 }
   0xb   :  { %p89_p6 = por %p88_p5, %p87_p4 }
   0xd   :  { %p90_p7 = pnand %p89_p6, %p83_p3 }
   0xf   :  { %93 = shalt.err (!%p90_p7)
}
  0x10   :  { %19 = dma.hbm_to_vmem [thread:$0]  %s173_s0, 256, %s17_s13, [#allocation3]  }
  0x11   :  { %116 = dma.done.wait [#allocation3], 256  }
  0x12   :  { %117 = vsyncadd [#allocation3], 4294967040  ;;  %v121_v0 = vmov 0   ;;  %v30_v1 = vld [vmem:[%s175_s2] sm:$0xff]  ;;  %v32_v2 = vlaneseq  ;;  %v28_v11 = vld [vmem:[#allocation2 + $0x8] sm:$0xff]  ;;  %s122_s0 = smov [#allocation5]  }
  0x13   :  { %71 = vset.pattern.permute.xlu0 %v121_v0  ;;  %v29_v6 = vld [vmem:[%s174_s1] sm:$0x3]  ;;  %s59_s28 = sshll.u32 %s122_s0, 4  ;;  %s60_s28 = int_to_ptr.vmem [resolvable:$true] %s59_s28 }
  0x14   :  { %44 = vperm.xlu0 %71, %v30_v1   ;;  %v33_v3 = vshrl.u32 %v32_v2, 7  ;;  %v27_v10 = vld [vmem:[#allocation2] sm:$0xff]  ;;  %s94_s2 = scalar_lea.vmem %s60_s28, 256  ;;  %p99_p9 = scmp.lt.s32.totalorder %s60_s28, %s60_s28 }
  0x15   :  { %p95_p8 = scmp.ne.s32.totalorder %s60_s28, %s94_s2  ;;  %p100_p10 = scmp.lt.s32.totalorder %s94_s2, %s94_s2 }
  0x16   :  { %v34_v4 = vsub.s32 0, %v33_v3  ;;  %v38_v5 = vsub.s32 1, %v33_v3 }
  0x17   :  { %p101_p11 = por %p100_p10, %p99_p9 }
  0x18   :  { %v35_v7 = vrot.slane %v29_v6, %v34_v4  ;;  %v39_v8 = vrot.slane %v29_v6, %v38_v5 }
  0x19   :  { %p102_p12 = pnand %p101_p11, %p95_p8 }
  0x93   :  { %v45_v9 = vpop.permute.xlu0 %44 }
  0x94   :  { %v47_v12 = vmul.f32 %v45_v9, %v35_v7  ;;  %v48_v13 = vmul.f32 %v45_v9, %v39_v8 }
  0x96   :  { %v49_v14 = vadd.f32 %v47_v12, %v27_v10  ;;  %v50_v15 = vadd.f32 %v48_v13, %v28_v11 }
  0x98   :  { %51 = vst [vmem:[#allocation5] sm:$0xff] %v49_v14  ;;  %52 = vst [vmem:[#allocation5 + $0x8] sm:$0xff] %v50_v15 }
  0x99   :  { %105 = shalt.err (!%p102_p12)
}
  0x9a   :  { %s106_s30 = scalar_lea.hbm %s176_s3, 256 }
  0x9b   :  { %p107_p13 = scmp.ne.s32.totalorder %s176_s3, %s106_s30  ;;  %p110_p0 = scmp.lt.u32.totalorder %s106_s30, %s176_s3 }
  0x9d   :  { %p112_p1 = pnand %p110_p0, %p107_p13 }
  0x9f   :  { %115 = shalt.err (!%p112_p1)
}
  0xa0   :  { %62 = dma.vmem_to_hbm [thread:$0]  %s60_s28, 256, %s176_s3, [#allocation4]  }
  0xa1   :  { %118 = dma.done.wait [#allocation4], 256  }
  0xa2   :  { %119 = vsyncadd [#allocation4], 4294967040 }
  0xa3   :  { %66 = vsyncpa [#allocation3], 1 }
  0xa4   :  { %67 = vsyncpa [#allocation4], 1 }

</bundles_post_ra>
